<compile_context>
chip_gen: v6e
topology: v6e:2x2x1
jax: 0.10.0
libtpu: 0.0.40
codegen_flags: <defaults>
</compile_context>

<pallas_src>
import functools

import jax
import jax.numpy as jnp
from jax.experimental import pallas as pl
from jax.experimental.pallas import tpu as pltpu


def _round_up(v: int, m: int) -> int:
    return (v + m - 1) // m * m


def _hw_caps():
    """Generation-aware tile caps.

    v7x: 64 MiB physical VMEM (32 MiB default scoped), 2 TensorCores/chip.
    v4/v5e/v6e: 128 MiB physical VMEM, 1 TensorCore -> deeper K tile is safe
    once the scoped-VMEM limit is raised explicitly.
    Unknown hardware falls back to the conservative (fits-every-default) caps.
    """
    kind = ""
    try:
        kind = jax.devices()[0].device_kind.lower()
    except Exception:
        pass
    is_v7 = ("v7" in kind) or ("7x" in kind)
    if is_v7 or not kind:
        # ~11 MiB double-buffered footprint: fits v5e 16 MiB / v6e 32 MiB /
        # v7x 32 MiB default scoped VMEM without any override.
        return dict(tm=512, tn=512, tk=1024, vmem_limit=None, multi_core=is_v7)
    # v4 / v5e / v6e: allow a deeper K tile (fewer accumulator passes) and
    # raise the scoped-VMEM limit so v5e's 16 MiB default doesn't re-tile.
    return dict(tm=512, tn=512, tk=2048, vmem_limit=64 << 20, multi_core=False)


# --------------------------------------------------------------------------
# Kernels
# --------------------------------------------------------------------------
def _proj_kernel_accumulate_out(x_ref, a_ref, o_ref, *, compute_dtype):
    """Tiled matmul step; f32 output block is VMEM-resident across the k axis,
    so we accumulate straight into it (no scratch, no final copy/cast)."""
    k = pl.program_id(2)
    prod = jnp.dot(
        x_ref[...].astype(compute_dtype),
        a_ref[...].astype(compute_dtype),
        preferred_element_type=jnp.float32,
    )

    @pl.when(k == 0)
    def _set():
        o_ref[...] = prod

    @pl.when(k > 0)
    def _acc():
        o_ref[...] += prod


def _proj_kernel_scratch_acc(x_ref, a_ref, o_ref, acc_ref, *, compute_dtype):
    """Tiled matmul step with an f32 scratch accumulator (narrow output dtype)."""
    k = pl.program_id(2)
    prod = jnp.dot(
        x_ref[...].astype(compute_dtype),
        a_ref[...].astype(compute_dtype),
        preferred_element_type=jnp.float32,
    )

    @pl.when(k == 0)
    def _set():
        acc_ref[...] = prod

    @pl.when(k > 0)
    def _acc():
        acc_ref[...] += prod

    @pl.when(k == pl.num_programs(2) - 1)
    def _store():
        o_ref[...] = acc_ref[...].astype(o_ref.dtype)


def _proj_kernel_single_block(x_ref, a_ref, o_ref, *, compute_dtype):
    """Whole problem fits in VMEM: one dot, no grid, no padding."""
    o_ref[...] = jnp.dot(
        x_ref[...].astype(compute_dtype),
        a_ref[...].astype(compute_dtype),
        preferred_element_type=jnp.float32,
    ).astype(o_ref.dtype)


# --------------------------------------------------------------------------
# Wrapper (== ManifoldProjectionLayer.forward)
# --------------------------------------------------------------------------
def manifold_projection(x: jax.Array, A: jax.Array, *, use_bf16_inputs: bool = False) -> jax.Array:
    """Pallas equivalent of ManifoldProjectionLayer.forward: x @ A.

    x: [..., n]   (any number of leading batch dims)
    A: [n, d]     (projection frame)
    use_bf16_inputs: optionally feed the MXU bf16 tiles (f32 accumulation) —
                     ~3x MXU throughput on v6e/v7x at a precision cost.
    returns: [..., d]
    """
    assert A.ndim == 2, "A must be (n, d)"
    *lead, n = x.shape
    n2, d = A.shape
    assert n == n2, f"inner dims must match: x[..., {n}] vs A[{n2}, {d}]"

    out_dtype = jnp.result_type(x.dtype, A.dtype)
    compute_dtype = jnp.bfloat16 if use_bf16_inputs else out_dtype

    # reshape only (contiguous leading dims -> free); NO wrapper-side astype:
    # dtype casts happen per-tile in VMEM inside the kernel.
    x2 = x.reshape(-1, n)
    M, K, N = x2.shape[0], n, d

    # ---------------- small-problem fast path (single block, no grid) -------
    itemsize = max(jnp.dtype(x2.dtype).itemsize, jnp.dtype(A.dtype).itemsize)
    small = (
        M <= 512 and K <= 1024 and N <= 512
        and (M * K + K * N + M * N) * itemsize <= (2 << 20)
    )
    if small:
        out = pl.pallas_call(
            functools.partial(_proj_kernel_single_block, compute_dtype=compute_dtype),
            out_shape=jax.ShapeDtypeStruct((M, N), out_dtype),
            in_specs=[
                pl.BlockSpec(memory_space=pltpu.MemorySpace.VMEM),
                pl.BlockSpec(memory_space=pltpu.MemorySpace.VMEM),
            ],
            out_specs=pl.BlockSpec(memory_space=pltpu.MemorySpace.VMEM),
        )(x2, A)
        return out.reshape(*lead, d)

    # ---------------- tiled MXU matmul path ---------------------------------
    caps = _hw_caps()
    tm = min(caps["tm"], _round_up(M, 8))
    tn = min(caps["tn"], _round_up(N, 128))
    tk = min(caps["tk"], _round_up(K, 128))

    # v7x has 2 TensorCores: make sure the parallel M axis has >= 2 blocks.
    if caps["multi_core"] and pl.cdiv(M, tm) < 2 and M > 8:
        tm = max(8, _round_up(-(-M // 2), 8))

    # Pad ONLY the reduction (K) axis: zeros are exact for a matmul and K
    # padding is required for correctness.  M/N edge blocks are handled by
    # Pallas masking — OOB garbage only reaches output rows/cols that are
    # never written back.
    Kp = _round_up(K, tk)
    a2 = A
    if Kp != K:
        x2 = jnp.pad(x2, ((0, 0), (0, Kp - K)))
        a2 = jnp.pad(A, ((0, Kp - K), (0, 0)))

    grid = (pl.cdiv(M, tm), pl.cdiv(N, tn), Kp // tk)

    if out_dtype == jnp.float32:
        kernel = functools.partial(_proj_kernel_accumulate_out, compute_dtype=compute_dtype)
        scratch_shapes = []
    else:
        kernel = functools.partial(_proj_kernel_scratch_acc, compute_dtype=compute_dtype)
        scratch_shapes = [pltpu.VMEM((tm, tn), jnp.float32)]

    cost = pl.CostEstimate(
        flops=2 * M * K * N,
        transcendentals=0,
        bytes_accessed=(
            M * K * jnp.dtype(x2.dtype).itemsize
            + K * N * jnp.dtype(a2.dtype).itemsize
            + M * N * jnp.dtype(out_dtype).itemsize
        ),
    )

    out = pl.pallas_call(
        kernel,
        out_shape=jax.ShapeDtypeStruct((M, N), out_dtype),
        grid_spec=pltpu.PrefetchScalarGridSpec(
            num_scalar_prefetch=0,
            grid=grid,
            in_specs=[
                pl.BlockSpec((tm, tk), lambda i, j, k: (i, k)),
                pl.BlockSpec((tk, tn), lambda i, j, k: (k, j)),
            ],
            out_specs=pl.BlockSpec((tm, tn), lambda i, j, k: (i, j)),
            scratch_shapes=scratch_shapes,
        ),
        compiler_params=pltpu.CompilerParams(
            dimension_semantics=("parallel", "parallel", "arbitrary"),
            vmem_limit_bytes=caps["vmem_limit"],
        ),
        cost_estimate=cost,
    )(x2, a2)

    return out.reshape(*lead, d)


def stiefel_init(key: jax.Array, n: int, d: int, dtype=jnp.float32) -> jax.Array:
    """Emulates geoopt.Stiefel().random(n, d): orthonormal-column frame."""
    g = jax.random.normal(key, (n, d), dtype=jnp.float32)
    q, _ = jnp.linalg.qr(g)  # orthonormal columns, shape (n, d)
    return q.astype(dtype)
    # TODO(synk): Stiefel retraction / Riemannian gradient handling lives in the
    # optimizer (geoopt), not in forward(); intentionally not implemented here.


if __name__ == "__main__":
    key = jax.random.PRNGKey(0)
    kx, ka, kx2, ka2 = jax.random.split(key, 4)

    # ---- Test 1: small shapes (single-block fast path), module-style usage --
    n, d = 32, 8
    x = jax.random.normal(kx, (2, 8, n), dtype=jnp.float32)   # [batch, seq, n]
    A = stiefel_init(ka, n, d)

    out = jax.block_until_ready(manifold_projection(x, A))
    ref = jnp.matmul(x, A, precision=jax.lax.Precision.HIGHEST)
    assert out.shape == (2, 8, d), out.shape
    assert out.dtype == x.dtype, out.dtype
    assert jnp.allclose(out, ref, atol=1e-3, rtol=1e-3), "mismatch vs x @ A (small path)"

    # ---- Test 2: larger shapes to exercise the tiled / K-padded path --------
    n_big, d_big = 200, 96
    x_big = jax.random.normal(kx2, (4, 256, n_big), dtype=jnp.float32)
    A_big = stiefel_init(ka2, n_big, d_big)

    out_big = jax.block_until_ready(manifold_projection(x_big, A_big))
    ref_big = jnp.matmul(x_big, A_big, precision=jax.lax.Precision.HIGHEST)
    assert out_big.shape == (4, 256, d_big), out_big.shape
    assert jnp.allclose(out_big, ref_big, atol=2e-3, rtol=2e-3), "mismatch vs x @ A (tiled path)"

    print("KERNEL_OK")
</pallas_src>

<mosaic_0001>
module attributes {stable_mosaic.version = 11 : i64} {
  func.func @_proj_kernel_single_block(%arg0: memref<16x32xf32, #tpu.memory_space<vmem>>, %arg1: memref<32x8xf32, #tpu.memory_space<vmem>>, %arg2: memref<16x8xf32, #tpu.memory_space<vmem>>) attributes {dimension_semantics = [], scalar_prefetch = 0 : i64, scratch_operands = 0 : i64, tpu.core_type = #tpu.core_type<tc>} {
    %c0 = arith.constant 0 : index
    %c0_0 = arith.constant 0 : index
    %0 = vector.load %arg0[%c0, %c0_0] : memref<16x32xf32, #tpu.memory_space<vmem>>, vector<16x32xf32>
    %c0_1 = arith.constant 0 : index
    %c0_2 = arith.constant 0 : index
    %1 = vector.load %arg1[%c0_1, %c0_2] : memref<32x8xf32, #tpu.memory_space<vmem>>, vector<32x8xf32>
    %cst = arith.constant dense<0.000000e+00> : vector<16x8xf32>
    %2 = tpu.matmul %0, %1, %cst {dimension_numbers = #tpu.dot_dimension_numbers<[1], [0], [0], [1], [0, 0, 1, 1], [], []>} : vector<16x32xf32>, vector<32x8xf32>, vector<16x8xf32> -> vector<16x8xf32>
    %c0_3 = arith.constant 0 : index
    %c0_4 = arith.constant 0 : index
    %3 = vector.load %arg2[%c0_3, %c0_4] : memref<16x8xf32, #tpu.memory_space<vmem>>, vector<16x8xf32>
    tpu.vector_store %arg2[%c0_3, %c0_4], %2 {strides = array<i32>} : memref<16x8xf32, #tpu.memory_space<vmem>>, vector<16x8xf32>,
    return
  }
}

</mosaic_0001>

<bundles_post_ra>
// kernel: tpu_custom_call.1
= control target key start
LH: loop header
LB: loop body
LE: loop exit
PB: predicated region body
PF: predicated region fallthrough
CT: control target
= control target key end

     0   :  { %vm17_vm0 = vcmask 261120   ;;  %vm99_vm1 = vcmask 64512   ;;  %s166_s1 = inlined_call_operand.vmem [shape: f32[32,8], index: 1, kind: input, shape index: {}]   ;;  %s167_s0 = inlined_call_operand.vmem [shape: f32[16,32], index: 0, kind: input, shape index: {}]   ;;  %s168_s2 = inlined_call_operand.vmem [shape: f32[16,8], index: 2, kind: output, shape index: {}]  }
   0x1   :  { %v16_v0 = vld [vmem:[%s166_s1 + $0x18] sm:$0xff]  ;;  %v15_v1 = vld [vmem:[%s166_s1 + $0x10] sm:$0xff]  ;;  %v11_v2 = vld [vmem:[%s167_s0] sm:$0xff] }
   0x2   :  { %114 = vmatprep.subr.mxu0 %v16_v0  ;;  %v14_v3 = vld [vmem:[%s166_s1 + $0x8] sm:$0xff]  ;;  %122 = vmatprep.mubr.msk.f32.mxu0 %vm17_vm0, %v11_v2  ;;  %v13_v4 = vld [vmem:[%s166_s1] sm:$0xff] }
   0x3   :  { %115 = vmatpush3.msra.mxu0 %v16_v0  ;;  %v12_v5 = vld [vmem:[%s167_s0 + $0x8] sm:$0xff] }
   0x4   :  { %116 = vmatprep.subr.mxu0 %v15_v1 }
   0x5   :  { %117 = vmatpush3.msra.mxu0 %v15_v1 }
   0x6   :  { %118 = vmatprep.subr.mxu0 %v14_v3 }
   0x7   :  { %119 = vmatpush3.msra.mxu0 %v14_v3 }
   0x8   :  { %120 = vmatprep.subr.mxu0 %v13_v4 }
   0x9   :  { %121 = vmatpush3.msra.mxu0 %v13_v4 }
   0xa   :  { %123 = vmatmul.mubr.msk.f32.vlgmr.msra.gmra.mxu0 %vm17_vm0, %v12_v5 }
  0xca   :  { %v124_v6 = vpop.f32.mrf.mxu0 }
  0xcb   :  { %101 = vst.msk [vmem:[%s168_s2 + $0x8] sm:$0xff] %vm99_vm1, %v124_v6 }
  0xcc   :  { %v90_v7 = vpop.f32.mrf.mxu0 }
  0xcd   :  { %100 = vst.msk [vmem:[%s168_s2] sm:$0xff] %vm99_vm1, %v90_v7 }

</bundles_post_ra>
